<compile_context>
chip_gen: v7x
topology: tpu7x:2x2x1
jax: 0.10.0
libtpu: 0.0.40
codegen_flags: <defaults>
</compile_context>

<pallas_src>
import functools

import jax
import jax.numpy as jnp
from jax.experimental import pallas as pl
from jax.experimental.pallas import tpu as pltpu


def _basic_layer_kernel(x_ref, wc_ref, w1b_ref, bc_ref, o_ref, *, d_out):
    """One (batch, L-tile) block: full BasicLayer forward fused in VMEM.

    Shapes (channel-first; lanes = points):
      x_ref   : (d_in,     tl)   input slab
      wc_ref  : (2*d_out,  d_in) rows [0:d_out]   = (w1a * bn1a_scale)^T
                                 rows [d_out:2d]  = (w2  * bn2_scale )^T
      w1b_ref : (d_out,    d_out) (w1b * bn1b_scale)^T
      bc_ref  : (2*d_out,  1)    rows [0:d_out]   = bn1a_bias
                                 rows [d_out:2d]  = bn2_bias + bn1b_bias
      o_ref   : (d_out,    tl)
    """
    x = x_ref[...].astype(wc_ref.dtype)                        # (d_in, tl)

    # Fused matmul for both branches that consume x (one MXU pass, shared x).
    hc = jnp.dot(wc_ref[...], x, preferred_element_type=jnp.float32)
    hc = hc + bc_ref[...]                                      # all BN biases in one add

    h1 = jnp.maximum(hc[:d_out], 0.0)                          # mlp1: conv+BN -> ReLU
    g = hc[d_out:]                                             # mlp2: conv+BN (+ b1b folded)

    # mlp1 second stage: conv+BN (scale folded into w1b, bias folded into g).
    h = jnp.dot(w1b_ref[...], h1.astype(w1b_ref.dtype),
                preferred_element_type=jnp.float32)

    # Residual add + ReLU — f32 elementwise (v5e-safe), cast only on the store.
    o_ref[...] = jnp.maximum(h + g, 0.0).astype(o_ref.dtype)


def fold_basic_layer_params(params, matmul_dtype=jnp.float32):
    """Fold BN (eval-mode) into the conv weights. Call ONCE per model, not per step."""
    (w1a, s1a, b1a, w1b, s1b, b1b, w2, s2, b2) = params
    w1a_f = (w1a * s1a[None, :]).T                         # (d_out, d_in)
    w1b_f = (w1b * s1b[None, :]).T                         # (d_out, d_out)
    w2_f = (w2 * s2[None, :]).T                            # (d_out, d_in)
    wc = jnp.concatenate([w1a_f, w2_f], axis=0).astype(matmul_dtype)      # (2*d_out, d_in)
    bc = jnp.concatenate([b1a, b2 + b1b], axis=0)[:, None].astype(jnp.float32)  # (2*d_out, 1)
    return wc, w1b_f.astype(matmul_dtype), bc


def basic_layer_forward(x_ncl, folded_params, *, tl=2048, out_dtype=None):
    """x_ncl: (N, d_in, L) in PyTorch NCL layout. Returns (N, d_out, L)."""
    wc, w1b_f, bc = folded_params
    N, d_in, L = x_ncl.shape
    d_out = w1b_f.shape[0]
    out_dtype = x_ncl.dtype if out_dtype is None else out_dtype

    # Lane tile: multiple of 128, no larger than the (128-rounded) point count.
    tl = max(tl // 128, 1) * 128
    tl = min(tl, pl.cdiv(L, 128) * 128)

    # Ragged L: partial last block is masked on writeback; no host pad/slice.
    grid = (N, pl.cdiv(L, tl))
    bcast = lambda n, l: (0, 0)   # weights / biases resident across the grid

    kernel = functools.partial(_basic_layer_kernel, d_out=d_out)
    return pl.pallas_call(
        kernel,
        out_shape=jax.ShapeDtypeStruct((N, d_out, L), out_dtype),
        grid_spec=pltpu.PrefetchScalarGridSpec(
            num_scalar_prefetch=0,
            grid=grid,
            in_specs=[
                pl.BlockSpec((None, d_in, tl), lambda n, l: (n, 0, l)),  # x
                pl.BlockSpec((2 * d_out, d_in), bcast),   # fused [w1a_f; w2_f]
                pl.BlockSpec((d_out, d_out), bcast),      # w1b_f
                pl.BlockSpec((2 * d_out, 1), bcast),      # fused BN biases
                # If profiling shows DMA-wait gaps between steps, add
                # pipeline_mode=pl.Buffered(3) to the x / out specs.
            ],
            out_specs=pl.BlockSpec((None, d_out, tl), lambda n, l: (n, 0, l)),
        ),
        compiler_params=pltpu.CompilerParams(
            # Both grid axes independent -> shard across TensorCores (v7x: 2 TCs).
            dimension_semantics=("parallel", "parallel"),
            # Per-step VMEM is a few hundred KiB-few MiB; default scoped limit
            # is ample on v5e/v6e/v7x, so no vmem_limit_bytes override needed.
        ),
    )(x_ncl, wc, w1b_f, bc)


def make_params(key, d_in, d_out, eps=1e-5):
    """Synthetic parameters mirroring the torch module (BN in eval mode).

    Conv1d(c_in, c_out, 1, bias=False) weight (c_out, c_in, 1) is stored in its
    matmul form (c_in, c_out).  Each BN1d(d_out) is folded to scale/bias.
    """
    # TODO(synk): training-mode BatchNorm (batch statistics) is not folded here;
    # this kernel implements eval-mode BN only.
    ks = jax.random.split(key, 9)

    def bn(kg, kb):
        gamma = jax.random.uniform(kg, (d_out,), jnp.float32, 0.5, 1.5)
        beta = jax.random.normal(kb, (d_out,), jnp.float32) * 0.1
        run_mean = jnp.zeros((d_out,), jnp.float32)
        run_var = jnp.ones((d_out,), jnp.float32)
        scale = gamma / jnp.sqrt(run_var + eps)
        bias = beta - run_mean * scale
        return scale, bias

    w1a = jax.random.normal(ks[0], (d_in, d_out), jnp.float32) * 0.2
    w1b = jax.random.normal(ks[1], (d_out, d_out), jnp.float32) * 0.2
    w2 = jax.random.normal(ks[2], (d_in, d_out), jnp.float32) * 0.2
    s1a, b1a = bn(ks[3], ks[4])
    s1b, b1b = bn(ks[5], ks[6])
    s2, b2 = bn(ks[7], ks[8])
    return (w1a, s1a, b1a, w1b, s1b, b1b, w2, s2, b2)


def reference_forward(x_ncl, params):
    """Pure-JAX reference (same math, no Pallas)."""
    (w1a, s1a, b1a, w1b, s1b, b1b, w2, s2, b2) = params
    x = jnp.transpose(x_ncl, (0, 2, 1))                     # (N, L, d_in)
    h = jnp.maximum(x @ w1a * s1a + b1a, 0.0)
    h = h @ w1b * s1b + b1b
    g = x @ w2 * s2 + b2
    return jnp.transpose(jnp.maximum(h + g, 0.0), (0, 2, 1))


if __name__ == "__main__":
    # Ragged L (not a multiple of 128) exercises the maskless-pad removal:
    # partial last L-block is handled by Pallas writeback masking.
    N, d_in, d_out, L = 2, 8, 32, 300
    key = jax.random.PRNGKey(0)
    kx, kp = jax.random.split(key)
    x = jax.random.normal(kx, (N, d_in, L), jnp.float32)
    params = make_params(kp, d_in, d_out)
    ref = reference_forward(x, params)

    # --- f32 path (strict check); tl=128 forces a full-block + partial-block grid.
    folded_f32 = fold_basic_layer_params(params, jnp.float32)
    out = jax.block_until_ready(basic_layer_forward(x, folded_f32, tl=128))
    assert out.shape == (N, d_out, L)
    assert jnp.allclose(out, ref, atol=1e-4, rtol=1e-4)

    # --- bf16 HBM I/O + bf16 MXU operands (the main memory-bound win on
    #     v5e/v6e/v7x); f32 accumulation and elementwise stay in the kernel.
    folded_bf16 = fold_basic_layer_params(params, jnp.bfloat16)
    out_bf16 = jax.block_until_ready(
        basic_layer_forward(x.astype(jnp.bfloat16), folded_bf16,
                            tl=2048, out_dtype=jnp.bfloat16))
    assert out_bf16.shape == (N, d_out, L)
    assert jnp.allclose(out_bf16.astype(jnp.float32), ref, atol=1e-1, rtol=1e-1)

    print("KERNEL_OK")
</pallas_src>

<mosaic_0001>
module attributes {stable_mosaic.version = 11 : i64} {
  func.func @_basic_layer_kernel(%arg0: i32, %arg1: i32, %arg2: memref<1x8x128xf32, #tpu.memory_space<vmem>>, %arg3: memref<64x8xf32, #tpu.memory_space<vmem>>, %arg4: memref<32x32xf32, #tpu.memory_space<vmem>>, %arg5: memref<64x1xf32, #tpu.memory_space<vmem>>, %arg6: memref<1x32x128xf32, #tpu.memory_space<vmem>>) attributes {dimension_semantics = [#tpu.dimension_semantics<parallel>, #tpu.dimension_semantics<parallel>], iteration_bounds = array<i64: 2, 3>, scalar_prefetch = 0 : i64, scratch_operands = 0 : i64, tpu.core_type = #tpu.core_type<tc>, window_params = [{transform_indices = @transform_0, window_bounds = array<i64: 1, 8, 128>}, {pipeline_mode = #tpu.pipeline_mode<synchronous>, transform_indices = @transform_1, window_bounds = array<i64: 64, 8>}, {pipeline_mode = #tpu.pipeline_mode<synchronous>, transform_indices = @transform_2, window_bounds = array<i64: 32, 32>}, {pipeline_mode = #tpu.pipeline_mode<synchronous>, transform_indices = @transform_3, window_bounds = array<i64: 64, 1>}, {transform_indices = @transform_4, window_bounds = array<i64: 1, 32, 128>}]} {
    %c0 = arith.constant 0 : index
    %c0_0 = arith.constant 0 : index
    %c0_1 = arith.constant 0 : index
    %0 = vector.load %arg2[%c0, %c0_0, %c0_1] : memref<1x8x128xf32, #tpu.memory_space<vmem>>, vector<1x8x128xf32>
    %1 = vector.shape_cast %0 : vector<1x8x128xf32> to vector<8x128xf32>
    %c0_2 = arith.constant 0 : index
    %c0_3 = arith.constant 0 : index
    %2 = vector.load %arg3[%c0_2, %c0_3] : memref<64x8xf32, #tpu.memory_space<vmem>>, vector<64x8xf32>
    %cst = arith.constant dense<0.000000e+00> : vector<64x128xf32>
    %3 = tpu.matmul %2, %1, %cst {dimension_numbers = #tpu.dot_dimension_numbers<[1], [0], [0], [1], [0, 0, 1, 1], [], []>} : vector<64x8xf32>, vector<8x128xf32>, vector<64x128xf32> -> vector<64x128xf32>
    %c0_4 = arith.constant 0 : index
    %c0_5 = arith.constant 0 : index
    %4 = vector.load %arg5[%c0_4, %c0_5] : memref<64x1xf32, #tpu.memory_space<vmem>>, vector<64x1xf32>
    %5 = vector.broadcast %4 : vector<64x1xf32> to vector<64x128xf32>
    %6 = arith.addf %3, %5 : vector<64x128xf32>
    %7 = vector.extract_strided_slice %6 {offsets = [0, 0], sizes = [32, 128], strides = [1, 1]} : vector<64x128xf32> to vector<32x128xf32>
    %cst_6 = arith.constant 0.000000e+00 : f32
    %8 = vector.broadcast %cst_6 : f32 to vector<32x128xf32>
    %9 = arith.maximumf %7, %8 : vector<32x128xf32>
    %10 = vector.extract_strided_slice %6 {offsets = [32, 0], sizes = [32, 128], strides = [1, 1]} : vector<64x128xf32> to vector<32x128xf32>
    %c0_7 = arith.constant 0 : index
    %c0_8 = arith.constant 0 : index
    %11 = vector.load %arg4[%c0_7, %c0_8] : memref<32x32xf32, #tpu.memory_space<vmem>>, vector<32x32xf32>
    %cst_9 = arith.constant dense<0.000000e+00> : vector<32x128xf32>
    %12 = tpu.matmul %11, %9, %cst_9 {dimension_numbers = #tpu.dot_dimension_numbers<[1], [0], [0], [1], [0, 0, 1, 1], [], []>} : vector<32x32xf32>, vector<32x128xf32>, vector<32x128xf32> -> vector<32x128xf32>
    %13 = arith.addf %12, %10 : vector<32x128xf32>
    %cst_10 = arith.constant 0.000000e+00 : f32
    %14 = vector.broadcast %cst_10 : f32 to vector<32x128xf32>
    %15 = arith.maximumf %13, %14 : vector<32x128xf32>
    %c0_11 = arith.constant 0 : index
    %c0_12 = arith.constant 0 : index
    %c0_13 = arith.constant 0 : index
    %16 = vector.load %arg6[%c0_11, %c0_12, %c0_13] : memref<1x32x128xf32, #tpu.memory_space<vmem>>, vector<1x32x128xf32>
    %17 = vector.shape_cast %16 : vector<1x32x128xf32> to vector<32x128xf32>
    %18 = vector.shape_cast %15 : vector<32x128xf32> to vector<1x32x128xf32>
    tpu.vector_store %arg6[%c0_11, %c0_12, %c0_13], %18 {strides = array<i32>} : memref<1x32x128xf32, #tpu.memory_space<vmem>>, vector<1x32x128xf32>,
    return
  }
  func.func @transform_0(%arg0: i32, %arg1: i32) -> (i32, i32, i32) {
    %c0_i32 = arith.constant 0 : i32
    %c0_i32_0 = arith.constant 0 : i32
    return %arg0, %c0_i32, %arg1 : i32, i32, i32
  }
  func.func @transform_1(%arg0: i32, %arg1: i32) -> (i32, i32) {
    %c0_i32 = arith.constant 0 : i32
    %c0_i32_0 = arith.constant 0 : i32
    %c0_i32_1 = arith.constant 0 : i32
    return %c0_i32, %c0_i32_0 : i32, i32
  }
  func.func @transform_2(%arg0: i32, %arg1: i32) -> (i32, i32) {
    %c0_i32 = arith.constant 0 : i32
    %c0_i32_0 = arith.constant 0 : i32
    %c0_i32_1 = arith.constant 0 : i32
    return %c0_i32, %c0_i32_0 : i32, i32
  }
  func.func @transform_3(%arg0: i32, %arg1: i32) -> (i32, i32) {
    %c0_i32 = arith.constant 0 : i32
    %c0_i32_0 = arith.constant 0 : i32
    %c0_i32_1 = arith.constant 0 : i32
    return %c0_i32, %c0_i32_0 : i32, i32
  }
  func.func @transform_4(%arg0: i32, %arg1: i32) -> (i32, i32, i32) {
    %c0_i32 = arith.constant 0 : i32
    %c0_i32_0 = arith.constant 0 : i32
    return %arg0, %c0_i32, %arg1 : i32, i32, i32
  }
}

</mosaic_0001>

<bundles_post_ra>
// kernel: tpu_custom_call.1
= control target key start
LH: loop header
LB: loop body
LE: loop exit
PB: predicated region body
PF: predicated region fallthrough
CT: control target
= control target key end

     0   :  { %9 = vsyncpa [#allocation3], 0  ;;  %s1123_s0 = inlined_call_operand.vmem [shape: f32[2,8,300], index: 0, kind: input, shape index: {}]   ;;  %s1124_s1 = inlined_call_operand.vmem [shape: f32[64,8], index: 1, kind: input, shape index: {}]   ;;  %s1125_s2 = inlined_call_operand.vmem [shape: f32[32,32], index: 2, kind: input, shape index: {}]   ;;  %s1126_s3 = inlined_call_operand.vmem [shape: f32[64,1], index: 3, kind: input, shape index: {}]   ;;  %s1127_s4 = inlined_call_operand.hbm [shape: f32[2,32,300], index: 4, kind: output, shape index: {}]  }
   0x1   :  { %11 = vsyncpa [#allocation3 + $0x1], 0  ;;  %s907_s15 = smov 0   ;;  %s909_s16 = smov 0  }
   0x2   :  { %s911_s17 = smov 0   ;;  %s913_s18 = smov 0  }
   0x3   :  { %s915_s19 = smov 0   ;;  %s917_s20 = smov 0  }
   0x4   :  { %s919_s21 = smov 0   ;;  %s921_s22 = smov 0  }
   0x5 LB: > { %s618_s23 = sadd.s32 4294967295, %s875_s22   ;;  %s619_s24 = sadd.s32 4294967294, %s875_s22   ;;  %s875_s22 = sphi %s921_s22, %s17_s22   ;;  %s871_s21 = sphi %s919_s21, %s1139_s21   ;;  %s867_s20 = sphi %s917_s20, %s1138_s20   ;;  %s863_s19 = sphi %s915_s19, %s1137_s19   ;;  %s859_s18 = sphi %s913_s18, %s1136_s18   ;;  %s855_s17 = sphi %s911_s17, %s1135_s17   ;;  %s851_s16 = sphi %s909_s16, %s1134_s16   ;;  %s847_s15 = sphi %s907_s15, %s1133_s15  }
   0x6   : > { %s26_s25 = sadd.s32 1, %s867_s20  ;;  %s29_s26 = sadd.s32 1, %s871_s21 }
   0x7   : > { %p27_p0 = scmp.ge.s32.totalorder %s26_s25, 3  ;;  %p139_p1 = scmp.ne.s32.totalorder %s855_s17, %s851_s16 }
   0x8   : > { %p140_p2 = scmp.eq.s32.totalorder %s618_s23, 5  ;;  %p145_p5 = scmp.ne.s32.totalorder %s851_s16, %s847_s15 }
   0x9   : > { %s1141_s25 = smov (%p27_p0, %s26_s25), 0  ;;  %s1143_s26 = smov (!%p27_p0, %s29_s26), %s871_s21 }
   0xa   : > { %s125_s27 = ssub.s32 %s867_s20, %s1141_s25  ;;  %p958_p3 = por %p140_p2, %p139_p1 }
   0xb   : > { %p31_p4 = scmp.ge.s32.totalorder %s1143_s26, 2  ;;  %p146_p6 = scmp.eq.s32.totalorder %s619_s24, 5 }
   0xc   : > { %p622_p7 = scmp.ge.s32.totalorder %s875_s22, 1  ;;  %p184_p9 = scmp.lt.s32.totalorder %s875_s22, 7 }
   0xd   : > { %s1145_s26 = smov (%p31_p4, %s1143_s26), 0  ;;  %p967_p8 = por %p146_p6, %p145_p5 }
   0xe   : > { %1130 = sst [smem:[#allocation5_spill]] %s1145_s26  ;;  %s124_s30 = ssub.s32 %s871_s21, %s1145_s26 }
   0xf   : > { %s129_s5 = sadd.s32 1, %s855_s17  ;;  %s126_s6 = sor.u32 %s125_s27, %s124_s30 }
  0x10   : > { %p185_p10 = pnand %p622_p7, %p184_p9  ;;  %p127_p11 = scmp.eq.s32.totalorder %s126_s6, 0 }
  0x11   : > { %p213_p12 = scmp.lt.s32.totalorder (!%p185_p10), %s863_s19, 1  ;;  %p215_p13 = scmp.lt.s32.totalorder (!%p185_p10), %s859_s18, 2  ;;  %v222_v0 = vld [vmem:[%s1124_s1] sm:$0xff] (!%p185_p10)  ;;  %vm278_vm0 = vcmask (!%p185_p10), 64512   ;;  %v877_v1 = vmov (!%p185_p10), 0   ;;  %v232_v3 = vld [vmem:[%s1126_s3 + $0x10] sm:$0xff] (!%p185_p10) }
  0x12   : > { %s976_s7 = scalar_select %p127_p11, %s855_s17, %s129_s5  }
  0x13   : > { %188 = sbr.rel (%p185_p10) target bundleno = 500 (0x1f4), region = 36  ;;  %660 = vmatprep.mubr.msk.f32.mxu1 (!%p185_p10), %vm278_vm0, %v222_v0  ;;  %779 = vset.pattern.permute.xlu0 (!%p185_p10), %v877_v1  ;;  %v230_v2 = vld [vmem:[%s1126_s3] sm:$0xff] (!%p185_p10)  ;;  %v231_v4 = vld [vmem:[%s1126_s3 + $0x8] sm:$0xff] (!%p185_p10)  ;;  %v233_v5 = vld [vmem:[%s1126_s3 + $0x18] sm:$0xff] (!%p185_p10)  ;;  %vm416_vm1 = vcmask (!%p185_p10), 261120   ;;  %s878_s11 = smov (!%p185_p10), [#allocation2]  }
  0x14   : > { %780 = vset.pattern.permute.xlu1 (!%p185_p10), %v877_v1  ;;  %240 = vperm.xlu0 (!%p185_p10), %779, %v230_v2   ;;  %v234_v6 = vld [vmem:[%s1126_s3 + $0x20] sm:$0xff] (!%p185_p10)  ;;  %v223_v8 = vld [vmem:[%s1124_s1 + $0x8] sm:$0xff] (!%p185_p10)  ;;  %v224_v10 = vld [vmem:[%s1124_s1 + $0x10] sm:$0xff] (!%p185_p10)  ;;  %s703_s27 = smul.u32 (!%p185_p10), 12, %s863_s19  ;;  %s785_s12 = sshll.u32 (!%p185_p10), %s878_s11, 4  ;;  %s786_s12 = int_to_ptr.vmem [resolvable:$false] %s785_s12 }
  0x15   : > { %250 = vperm.xlu1 (!%p185_p10), %780, %v232_v3   ;;  %v235_v9 = vld [vmem:[%s1126_s3 + $0x28] sm:$0xff] (!%p185_p10)  ;;  %v236_v11 = vld [vmem:[%s1126_s3 + $0x30] sm:$0xff] (!%p185_p10)  ;;  %v225_v12 = vld [vmem:[%s1124_s1 + $0x18] sm:$0xff] (!%p185_p10)  ;;  %s787_s14 = scalar_lea.vmem (!%p185_p10), %s786_s12, 1024 }
  0x16   : > { %v237_v13 = vld [vmem:[%s1126_s3 + $0x38] sm:$0xff] (!%p185_p10)  ;;  %v226_v14 = vld [vmem:[%s1124_s1 + $0x20] sm:$0xff] (!%p185_p10)  ;;  %v227_v15 = vld [vmem:[%s1124_s1 + $0x28] sm:$0xff] (!%p185_p10)  ;;  %s534_s5 = sadd.s32 (!%p185_p10), %s859_s18, %s703_s27 }
  0x17   : > { %v228_v16 = vld [vmem:[%s1124_s1 + $0x30] sm:$0xff] (!%p185_p10)  ;;  %v229_v17 = vld [vmem:[%s1124_s1 + $0x38] sm:$0xff] (!%p185_p10)  ;;  %v412_v18 = vld [vmem:[%s1125_s2] sm:$0xff] (!%p185_p10) }
  0x18   : > { %245 = vperm.xlu0 (!%p185_p10), %779, %v231_v4   ;;  %680 = vmatprep.mubr.msk.f32.mxu0 (!%p185_p10), %vm416_vm1, %v412_v18  ;;  %v413_v41 = vld [vmem:[%s1125_s2 + $0x8] sm:$0xff] (!%p185_p10)  ;;  %v414_v42 = vld [vmem:[%s1125_s2 + $0x10] sm:$0xff] (!%p185_p10)  ;;  %v415_v43 = vld [vmem:[%s1125_s2 + $0x18] sm:$0xff] (!%p185_p10) }
  0x19   : > { %255 = vperm.xlu1 (!%p185_p10), %780, %v233_v5  }
  0x1a   : > { %s214_s10 = scalar_select %p213_p12, %s863_s19, 1 }
  0x1b   : > { %s216_s13 = scalar_select %p215_p13, %s859_s18, 2 }
  0x1c   : > { %s702_s24 = smul.u32 3, %s214_s10  ;;  %260 = vperm.xlu0 %779, %v234_v6   ;;  %s210_s10 = sand.u32 1, %s851_s16  }
  0x1d   : > { %265 = vperm.xlu1 %780, %v235_v9   ;;  %s623_s30 = sshll.u32 %s210_s10, 5  ;;  %s638_s19 = sshll.u32 %s534_s5, 7 }
  0x1e   : > { %s218_s8 = sadd.s32 %s702_s24, %s216_s13  ;;  %s212_s13 = scalar_lea.vmem [#allocation2], %s623_s30 }
  0x1f   : > { %s624_s9 = sshll.u32 %s218_s8, 3  ;;  %s537_s24 = sshll.u32 %s212_s13, 4  ;;  %s1062_s24 = int_to_ptr.vmem [resolvable:$true] %s537_s24 }
  0x20   : > { %s220_s26 = scalar_lea.vmem %s1123_s0, %s624_s9  ;;  %270 = vperm.xlu0 %779, %v236_v11   ;;  %s1071_s8 = scalar_lea.sflag [#allocation3], %s210_s10 }
  0x21   : > { %v221_v7 = vld [vmem:[%s220_s26] sm:$0xff]  ;;  %275 = vperm.xlu1 %780, %v237_v13   ;;  %s1067_s26 = scalar_lea.hbm %s1127_s4, %s638_s19  ;;  %s781_s9 = scalar_lea.vmem %s1062_s24, 512 }
  0x22   : > { %658 = vmatprep.subr.mxu1 %v221_v7  ;;  %p782_p0 = scmp.ne.s32.totalorder %s1062_s24, %s781_s9  ;;  %p788_p4 = scmp.lt.s32.totalorder %s1062_s24, %s786_s12 }
  0x23   : > { %659 = vmatpush3.msra.mxu1 %v221_v7  ;;  %p789_p5 = scmp.lt.s32.totalorder %s787_s14, %s781_s9 }
  0x24   : > { %661 = vmatmul.mubr.msk.f32.vlgmr.msra.gmra.mrb[0].mxu1 %vm278_vm0, %v223_v8  ;;  %p783_p1 = pnand %p782_p0, %p958_p3 }
  0x25   : > { %663 = vmatprep.mubr.msk.f32.mxu1 %vm278_vm0, %v224_v10  ;;  %p790_p6 = por %p789_p5, %p788_p4 }
  0x26   : > { %p784_p2 = pneg %p783_p1 }
  0x28   : > { %664 = vmatmul.mubr.msk.f32.gmra.mrb[2].mxu1 %vm278_vm0, %v225_v12  ;;  %p791_p7 = pnand %p790_p6, %p784_p2 }
  0x29   : > { %666 = vmatprep.mubr.msk.f32.mxu1 %vm278_vm0, %v226_v14 }
  0x2c   : > { %667 = vmatmul.mubr.msk.f32.gmra.mrb[4].mxu1 %vm278_vm0, %v227_v15 }
  0x2d   : > { %669 = vmatprep.mubr.msk.f32.mxu1 %vm278_vm0, %v228_v16 }
  0x30   : > { %670 = vmatmul.mubr.msk.f32.gmra.mrb[6].mxu1 %vm278_vm0, %v229_v17 }
  0x93   : > { %v241_v19 = vpop.permute.xlu0 %240 }
  0x94   : > { %v251_v20 = vpop.permute.xlu1 %250 }
  0x97   : > { %v246_v21 = vpop.permute.xlu0 %245 }
  0x98   : > { %v256_v27 = vpop.permute.xlu1 %255 }
  0x9b   : > { %v261_v45 = vpop.permute.xlu0 %260 }
  0x9c   : > { %v266_v44 = vpop.permute.xlu1 %265 }
  0x9f   : > { %v271_v53 = vpop.permute.xlu0 %270 }
  0xa0   : > { %v276_v51 = vpop.permute.xlu1 %275 }
  0xf7   : > { %v662_v22 = vpop.f32.mrb[0].mxu1 }
  0xf8   : > { %v375_v23 = vadd.f32 %v662_v22, %v246_v21  ;;  %v369_v24 = vpop.f32.mrb[1].mxu1 }
  0xf9   : > { %v370_v25 = vadd.f32 %v369_v24, %v241_v19 }
  0xfa   : > { %v409_v26 = vmax.f32 %v375_v23, 0.0 }
  0xfb   : > { %v408_v28 = vmax.f32 %v370_v25, 0.0  ;;  %v665_v29 = vpop.f32.mrb[2].mxu1 }
  0xfc   : > { %v385_v30 = vadd.f32 %v665_v29, %v256_v27  ;;  %v379_v31 = vpop.f32.mrb[3].mxu1 }
  0xfd   : > { %v380_v32 = vadd.f32 %v379_v31, %v251_v20  ;;  %v686_v33 = vpack.c.bf16 %v409_v26, %v408_v28 }
  0xfe   : > { %v411_v34 = vmax.f32 %v385_v30, 0.0 }
  0xff   : > { %v410_v35 = vmax.f32 %v380_v32, 0.0  ;;  %v668_v36 = vpop.f32.mrb[4].mxu1  ;;  %687 = vmatprep.subr.bf16.mxu0 %v686_v33 }
 0x100   : > { %v389_v37 = vpop.f32.mrb[5].mxu1  ;;  %689 = vmatpush3.bf16.msra.mxu0 %v686_v33  ;;  %v395_v46 = vadd.f32 %v668_v36, %v266_v44 }
 0x101   : > { %v690_v38 = vpack.c.bf16 %v411_v34, %v410_v35  ;;  %v390_v47 = vadd.f32 %v389_v37, %v261_v45 }
 0x103   : > { %v671_v39 = vpop.f32.mrb[6].mxu1  ;;  %691 = vmatprep.subr.bf16.mxu0 %v690_v38 }
 0x104   : > { %v399_v40 = vpop.f32.mrb[7].mxu1  ;;  %693 = vmatpush3.bf16.msra.mxu0 %v690_v38  ;;  %v405_v54 = vadd.f32 %v671_v39, %v276_v51 }
 0x105   : > { %v400_v56 = vadd.f32 %v399_v40, %v271_v53 }
 0x107   : > { %681 = vmatmul.mubr.msk.f32.vlgmr.msra.gmra.mrb[0].mxu0 %vm416_vm1, %v413_v41 }
 0x108   : > { %683 = vmatprep.mubr.msk.f32.mxu0 %vm416_vm1, %v414_v42 }
 0x10b   : > { %684 = vmatmul.mubr.msk.f32.gmra.mrb[2].mxu0 %vm416_vm1, %v415_v43 }
 0x1da   : > { %v682_v48 = vpop.f32.mrb[0].mxu0 }
 0x1db   : > { %v501_v49 = vadd.f32 %v682_v48, %v395_v46  ;;  %v495_v50 = vpop.f32.mrb[1].mxu0 }
 0x1dc   : > { %v496_v52 = vadd.f32 %v495_v50, %v390_v47 }
 0x1dd   : > { %v515_v55 = vmax.f32 %v501_v49, 0.0 }
 0x1de   : > { %v514_v57 = vmax.f32 %v496_v52, 0.0  ;;  %v685_v58 = vpop.f32.mrb[2].mxu0 }
 0x1df   : > { %519 = vst [vmem:[%s212_s13 + $0x8] sm:$0xff] %v515_v55  ;;  %v511_v59 = vadd.f32 %v685_v58, %v405_v54  ;;  %v505_v60 = vpop.f32.mrb[3].mxu0 }
 0x1e0   : > { %518 = vst [vmem:[%s212_s13] sm:$0xff] %v514_v57  ;;  %v506_v61 = vadd.f32 %v505_v60, %v400_v56 }
 0x1e1   : > { %v517_v62 = vmax.f32 %v511_v59, 0.0 }
 0x1e2   : > { %v516_v63 = vmax.f32 %v506_v61, 0.0 }
 0x1e3   : > { %521 = vst [vmem:[%s212_s13 + $0x18] sm:$0xff] %v517_v62 }
 0x1e4   : > { %520 = vst [vmem:[%s212_s13 + $0x10] sm:$0xff] %v516_v63 }
 0x1e5   : > { %794 = shalt.err (!%p791_p7)
}
 0x1e6   : > { %s795_s23 = scalar_lea.hbm %s1067_s26, 512  ;;  %s799_s30 = scalar_lea.hbm %s1127_s4, 3072 }
 0x1e7   : > { %p796_p9 = scmp.ne.s32.totalorder %s1067_s26, %s795_s23  ;;  %p800_p12 = scmp.lt.u32.totalorder %s1067_s26, %s1127_s4 }
 0x1e8   : > { %p801_p13 = scmp.lt.u32.totalorder %s799_s30, %s795_s23  ;;  %p803_p1 = scmp.lt.u32.totalorder %s795_s23, %s1067_s26 }
 0x1e9   : > { %p797_p10 = pnand %p796_p9, %p958_p3 }
 0x1ea   : > { %p802_p0 = por %p801_p13, %p800_p12 }
 0x1eb   : > { %p798_p11 = pneg %p797_p10 }
 0x1ec   : > { %p804_p2 = por %p803_p1, %p802_p0 }
 0x1ee   : > { %p805_p4 = pnand %p804_p2, %p798_p11 }
 0x1f0   : > { %808 = shalt.err (!%p805_p4)
}
 0x1f1   : > { %s879_s19 = smov 128   ;;  %s880_s18 = smov 384  }
 0x1f2   : > { %s881_s6 = smov 8  }
 0x1f3   : > { %704 = dma.vmem_to_hbm [thread:$0]  (%p958_p3), %s1062_s24, 512, %s1067_s26, %s1071_s8, %s879_s19, %s880_s18, %s881_s6  }
 0x1f4 PF: > { %p710_p5 = scmp.ge.s32.totalorder %s875_s22, 2  ;;  %s552_s9 = sand.u32 1, %s847_s15  }
 0x1f5   : > { %s553_s11 = scalar_lea.sflag [#allocation3], %s552_s9 }
 0x1f6   : > { %p707_p6 = pnand %p710_p5, %p967_p8 }
 0x1f8   : > { %842 = dma.done.wait (!%p707_p6), %s553_s11, 512  }
 0x1f9   : > { %844 = vsyncadd (!%p707_p6), %s553_s11, 4294966784  ;;  %s17_s22 = sadd.s32 1, %s875_s22   ;;  %s1132_s28 = sld [smem:[#allocation5_spill]] }
 0x1fa   : > { %p14_p7 = scmp.ge.s32.totalorder %s17_s22, 8   ;;  %s1133_s15 = smov %s851_s16 }
 0x1fb   : > { %s1134_s16 = smov %s855_s17  ;;  %s1135_s17 = smov %s976_s7 }
 0x1fc   : > { %s1136_s18 = smov %s867_s20  ;;  %s1137_s19 = smov %s871_s21 }
 0x1fd   : > { %s1138_s20 = smov %s1141_s25  ;;  %16 = sbr.rel (!%p14_p7) target bundleno = 5 (0x5), region = 71 }
 0x1ff   : > { %s1139_s21 = smov %s1132_s28 }
 0x204   :  { %558 = vsyncpa [#allocation3], 1 }
 0x205   :  { %560 = vsyncpa [#allocation3 + $0x1], 1 }

</bundles_post_ra>
